<compile_context>
chip_gen: v7x
topology: tpu7x:2x2x1
jax: 0.10.0
libtpu: 0.0.40
codegen_flags: <defaults>
</compile_context>

<pallas_src>
import math

import jax
import jax.numpy as jnp
from jax import lax
from jax.experimental import pallas as pl
from jax.experimental.pallas import tpu as pltpu


def _shift_hw(a, dh, dw, fill):
    """b[h, w] = a[h + dh, w + dw] for in-bounds taps, `fill` elsewhere.

    dh, dw are static ints in {-1, 0, 1}. Rolls go to the XLU slot and masks to the
    VPU; everything stays in vregs (no VMEM scratch traffic, no partial stores).
    """
    H, W = a.shape
    out = a
    if dh != 0:
        out = pltpu.roll(out, shift=(-dh) % H, axis=0)        # out[h] = a[(h+dh) % H]
        rows = lax.broadcasted_iota(jnp.int32, (H, W), 0)
        out = jnp.where((rows + dh >= 0) & (rows + dh < H), out, fill)
    if dw != 0:
        out = pltpu.roll(out, shift=(-dw) % W, axis=1)        # out[w] = a[(w+dw) % W]
        cols = lax.broadcasted_iota(jnp.int32, (H, W), 1)
        out = jnp.where((cols + dw >= 0) & (cols + dw < W), out, fill)
    return out


def _pool_conv_kernel(x_ref, w_ref, b_ref, y_ref):
    """Per-batch: channel reduce -> 3x3 max/avg pool -> Conv2d(2->1, 3x3) -> y."""
    _, C, H, W = x_ref.shape
    x = x_ref[0].astype(jnp.float32)                      # (C, H, W)

    # Reduce over the spectral-channel axis (MaxPool3d / AvgPool3d kernel depth = C).
    cmax = jnp.max(x, axis=0)                             # (H, W)
    csum = jnp.sum(x, axis=0)                             # (H, W)

    # Separable 3x3 spatial window: lane (W) pass, then sublane (H) pass.
    rmax, rsum = cmax, csum
    for dw in (-1, 1):
        rmax = jnp.maximum(rmax, _shift_hw(cmax, 0, dw, -jnp.inf))
        rsum = rsum + _shift_hw(csum, 0, dw, 0.0)
    x1, s2 = rmax, rsum
    for dh in (-1, 1):
        x1 = jnp.maximum(x1, _shift_hw(rmax, dh, 0, -jnp.inf))
        s2 = s2 + _shift_hw(rsum, dh, 0, 0.0)
    x2 = s2 * (1.0 / (C * 9))      # AvgPool3d default count_include_pad=True

    # Conv2d(2 -> 1, 3x3, stride 1, pad 1) over concat(maxpool, avgpool).
    # Per tap: combine both input channels first (2 mul + 1 add), then ONE shift.
    y = jnp.zeros((H, W), jnp.float32)
    for kh in range(3):
        for kw in range(3):
            z = w_ref[kh * 3 + kw] * x1 + w_ref[9 + kh * 3 + kw] * x2
            y = y + _shift_hw(z, kh - 1, kw - 1, 0.0)
    y_ref[0] = y + b_ref[0]


def _apply_kernel(x_ref, y_ref, stats_ref, out1_ref, out2_ref):
    """Per-batch lane-dense epilogue: BN-normalize, ReLU, broadcast multiply."""
    mean = stats_ref[0]
    inv_std = stats_ref[1]
    wts = jnp.maximum((y_ref[0] - mean) * inv_std, 0.0)           # (1, H*W)
    out2_ref[0] = wts.astype(out2_ref.dtype)
    out1_ref[0] = (x_ref[0].astype(jnp.float32) * wts).astype(out1_ref.dtype)


def spatial_spectrum_attention(x, conv_w, conv_b):
    """x: (N, C, H, W); conv_w: (1, 2, 3, 3); conv_b: (1,)."""
    N, C, H, W = x.shape
    HW = H * W
    w_flat = conv_w.reshape(-1).astype(jnp.float32)       # (18,) scalars in SMEM
    b_flat = conv_b.reshape(-1).astype(jnp.float32)       # (1,)

    # ---- pass 1: pooled + conv map, one batch element per grid step ----
    y = pl.pallas_call(
        _pool_conv_kernel,
        out_shape=jax.ShapeDtypeStruct((N, H, W), jnp.float32),
        grid=(N,),
        in_specs=[
            pl.BlockSpec((1, C, H, W), lambda n: (n, 0, 0, 0)),
            pl.BlockSpec(memory_space=pltpu.MemorySpace.SMEM),   # conv weights
            pl.BlockSpec(memory_space=pltpu.MemorySpace.SMEM),   # conv bias
        ],
        out_specs=pl.BlockSpec((1, H, W), lambda n: (n, 0, 0)),
        compiler_params=pltpu.CompilerParams(dimension_semantics=("parallel",)),
    )(x, w_flat, b_flat)

    # ---- BatchNorm2d(1), training mode: global batch statistics (tiny reduction) ----
    eps = 1e-5
    mean = jnp.mean(y)
    var = jnp.mean(jnp.square(y - mean))
    inv_std = 1.0 / jnp.sqrt(var + eps)
    stats = jnp.stack([mean, inv_std]).astype(jnp.float32)        # (2,) -> SMEM

    # ---- pass 2: lane-dense normalize + ReLU + broadcast multiply ----
    out1_flat, out2_flat = pl.pallas_call(
        _apply_kernel,
        out_shape=(
            jax.ShapeDtypeStruct((N, C, HW), x.dtype),
            jax.ShapeDtypeStruct((N, 1, HW), x.dtype),
        ),
        grid=(N,),
        in_specs=[
            pl.BlockSpec((1, C, HW), lambda n: (n, 0, 0)),
            pl.BlockSpec((1, 1, HW), lambda n: (n, 0, 0)),
            pl.BlockSpec(memory_space=pltpu.MemorySpace.SMEM),   # (mean, inv_std)
        ],
        out_specs=(
            pl.BlockSpec((1, C, HW), lambda n: (n, 0, 0)),
            pl.BlockSpec((1, 1, HW), lambda n: (n, 0, 0)),
        ),
        compiler_params=pltpu.CompilerParams(dimension_semantics=("parallel",)),
    )(x.reshape(N, C, HW), y.reshape(N, 1, HW), stats)

    return out1_flat.reshape(N, C, H, W), out2_flat.reshape(N, 1, H, W)


def _reference(x, conv_w, conv_b):
    """Pure-JAX reference mirroring the PyTorch module (training-mode BN)."""
    N, C, H, W = x.shape
    pad = ((0, 0), (0, 0), (1, 1), (1, 1))
    x1 = lax.reduce_window(x, -jnp.inf, lax.max, (1, C, 3, 3), (1, 1, 1, 1), pad)
    x2 = lax.reduce_window(x, 0.0, lax.add, (1, C, 3, 3), (1, 1, 1, 1), pad) / (C * 9)
    w2 = jnp.concatenate([x1, x2], axis=1)                 # (N, 2, H, W)
    y = lax.conv_general_dilated(w2, conv_w, (1, 1), ((1, 1), (1, 1)),
                                 dimension_numbers=("NCHW", "OIHW", "NCHW"))
    y = y + conv_b.reshape(1, 1, 1, 1)
    mean = jnp.mean(y)
    var = jnp.mean(jnp.square(y - mean))
    y = (y - mean) / jnp.sqrt(var + 1e-5)
    wts = jnp.maximum(y, 0.0)
    return x * wts, wts


if __name__ == "__main__":
    N, C, H, W = 2, 4, 16, 16          # num_channel = 4
    key = jax.random.PRNGKey(0)
    kx, kw, kb = jax.random.split(key, 3)

    x = jax.random.normal(kx, (N, C, H, W), dtype=jnp.float32)
    bound = 1.0 / math.sqrt(2 * 3 * 3)  # Conv2d default init bound
    conv_w = jax.random.uniform(kw, (1, 2, 3, 3), jnp.float32, -bound, bound)
    conv_b = jax.random.uniform(kb, (1,), jnp.float32, -bound, bound)

    out, wts = spatial_spectrum_attention(x, conv_w, conv_b)
    jax.block_until_ready((out, wts))

    ref_out, ref_wts = _reference(x, conv_w, conv_b)
    assert out.shape == (N, C, H, W) and wts.shape == (N, 1, H, W)
    assert bool(jnp.allclose(out, ref_out, rtol=1e-4, atol=1e-5)), "attended output mismatch"
    assert bool(jnp.allclose(wts, ref_wts, rtol=1e-4, atol=1e-5)), "weight map mismatch"

    print("KERNEL_OK")
</pallas_src>

<mosaic_0001>
module attributes {stable_mosaic.version = 11 : i64} {
  func.func @_pool_conv_kernel(%arg0: i32, %arg1: memref<1x4x16x16xf32, #tpu.memory_space<vmem>>, %arg2: memref<18xf32, #tpu.memory_space<smem>>, %arg3: memref<1xf32, #tpu.memory_space<smem>>, %arg4: memref<1x16x16xf32, #tpu.memory_space<vmem>>) attributes {dimension_semantics = [#tpu.dimension_semantics<parallel>], iteration_bounds = array<i64: 2>, scalar_prefetch = 0 : i64, scratch_operands = 0 : i64, tpu.core_type = #tpu.core_type<tc>, window_params = [{transform_indices = @transform_0, window_bounds = array<i64: 1, 4, 16, 16>}, {transform_indices = @transform_1, window_bounds = array<i64: 18>}, {transform_indices = @transform_2, window_bounds = array<i64: 1>}, {transform_indices = @transform_3, window_bounds = array<i64: 1, 16, 16>}]} {
    %c0 = arith.constant 0 : index
    %c0_0 = arith.constant 0 : index
    %c0_1 = arith.constant 0 : index
    %c0_2 = arith.constant 0 : index
    %0 = vector.load %arg1[%c0, %c0_0, %c0_1, %c0_2] : memref<1x4x16x16xf32, #tpu.memory_space<vmem>>, vector<1x4x16x16xf32>
    %1 = vector.shape_cast %0 : vector<1x4x16x16xf32> to vector<4x16x16xf32>
    %cst = arith.constant dense<0xFF800000> : vector<16x16xf32>
    %2 = vector.multi_reduction <maximumf>, %1, %cst [0] : vector<4x16x16xf32> to vector<16x16xf32>
    %cst_3 = arith.constant dense<0.000000e+00> : vector<16x16xf32>
    %3 = vector.multi_reduction <add>, %1, %cst_3 [0] : vector<4x16x16xf32> to vector<16x16xf32>
    %c1_i32 = arith.constant 1 : i32
    %4 = tpu.dynamic_rotate %2 by %c1_i32 dim 1 : vector<16x16xf32>, i32 -> vector<16x16xf32>
    %5 = tpu.iota {dimensions = array<i32: 1>} : vector<16x16xi32>
    %c-1_i32 = arith.constant -1 : i32
    %6 = vector.broadcast %c-1_i32 : i32 to vector<16x16xi32>
    %7 = arith.addi %5, %6 : vector<16x16xi32>
    %c0_i32 = arith.constant 0 : i32
    %8 = vector.broadcast %c0_i32 : i32 to vector<16x16xi32>
    %9 = arith.cmpi sge, %7, %8 : vector<16x16xi32>
    %c-1_i32_4 = arith.constant -1 : i32
    %10 = vector.broadcast %c-1_i32_4 : i32 to vector<16x16xi32>
    %11 = arith.addi %5, %10 : vector<16x16xi32>
    %c16_i32 = arith.constant 16 : i32
    %12 = vector.broadcast %c16_i32 : i32 to vector<16x16xi32>
    %13 = arith.cmpi slt, %11, %12 : vector<16x16xi32>
    %14 = arith.andi %9, %13 : vector<16x16xi1>
    %cst_5 = arith.constant 0xFF800000 : f32
    %15 = vector.broadcast %cst_5 : f32 to vector<16x16xf32>
    %16 = arith.select %14, %4, %15 : vector<16x16xi1>, vector<16x16xf32>
    %17 = arith.maximumf %2, %16 : vector<16x16xf32>
    %c1_i32_6 = arith.constant 1 : i32
    %18 = tpu.dynamic_rotate %3 by %c1_i32_6 dim 1 : vector<16x16xf32>, i32 -> vector<16x16xf32>
    %19 = tpu.iota {dimensions = array<i32: 1>} : vector<16x16xi32>
    %c-1_i32_7 = arith.constant -1 : i32
    %20 = vector.broadcast %c-1_i32_7 : i32 to vector<16x16xi32>
    %21 = arith.addi %19, %20 : vector<16x16xi32>
    %c0_i32_8 = arith.constant 0 : i32
    %22 = vector.broadcast %c0_i32_8 : i32 to vector<16x16xi32>
    %23 = arith.cmpi sge, %21, %22 : vector<16x16xi32>
    %c-1_i32_9 = arith.constant -1 : i32
    %24 = vector.broadcast %c-1_i32_9 : i32 to vector<16x16xi32>
    %25 = arith.addi %19, %24 : vector<16x16xi32>
    %c16_i32_10 = arith.constant 16 : i32
    %26 = vector.broadcast %c16_i32_10 : i32 to vector<16x16xi32>
    %27 = arith.cmpi slt, %25, %26 : vector<16x16xi32>
    %28 = arith.andi %23, %27 : vector<16x16xi1>
    %cst_11 = arith.constant 0.000000e+00 : f32
    %29 = vector.broadcast %cst_11 : f32 to vector<16x16xf32>
    %30 = arith.select %28, %18, %29 : vector<16x16xi1>, vector<16x16xf32>
    %31 = arith.addf %3, %30 : vector<16x16xf32>
    %c15_i32 = arith.constant 15 : i32
    %32 = tpu.dynamic_rotate %2 by %c15_i32 dim 1 : vector<16x16xf32>, i32 -> vector<16x16xf32>
    %33 = tpu.iota {dimensions = array<i32: 1>} : vector<16x16xi32>
    %c1_i32_12 = arith.constant 1 : i32
    %34 = vector.broadcast %c1_i32_12 : i32 to vector<16x16xi32>
    %35 = arith.addi %33, %34 : vector<16x16xi32>
    %c0_i32_13 = arith.constant 0 : i32
    %36 = vector.broadcast %c0_i32_13 : i32 to vector<16x16xi32>
    %37 = arith.cmpi sge, %35, %36 : vector<16x16xi32>
    %c1_i32_14 = arith.constant 1 : i32
    %38 = vector.broadcast %c1_i32_14 : i32 to vector<16x16xi32>
    %39 = arith.addi %33, %38 : vector<16x16xi32>
    %c16_i32_15 = arith.constant 16 : i32
    %40 = vector.broadcast %c16_i32_15 : i32 to vector<16x16xi32>
    %41 = arith.cmpi slt, %39, %40 : vector<16x16xi32>
    %42 = arith.andi %37, %41 : vector<16x16xi1>
    %cst_16 = arith.constant 0xFF800000 : f32
    %43 = vector.broadcast %cst_16 : f32 to vector<16x16xf32>
    %44 = arith.select %42, %32, %43 : vector<16x16xi1>, vector<16x16xf32>
    %45 = arith.maximumf %17, %44 : vector<16x16xf32>
    %c15_i32_17 = arith.constant 15 : i32
    %46 = tpu.dynamic_rotate %3 by %c15_i32_17 dim 1 : vector<16x16xf32>, i32 -> vector<16x16xf32>
    %47 = tpu.iota {dimensions = array<i32: 1>} : vector<16x16xi32>
    %c1_i32_18 = arith.constant 1 : i32
    %48 = vector.broadcast %c1_i32_18 : i32 to vector<16x16xi32>
    %49 = arith.addi %47, %48 : vector<16x16xi32>
    %c0_i32_19 = arith.constant 0 : i32
    %50 = vector.broadcast %c0_i32_19 : i32 to vector<16x16xi32>
    %51 = arith.cmpi sge, %49, %50 : vector<16x16xi32>
    %c1_i32_20 = arith.constant 1 : i32
    %52 = vector.broadcast %c1_i32_20 : i32 to vector<16x16xi32>
    %53 = arith.addi %47, %52 : vector<16x16xi32>
    %c16_i32_21 = arith.constant 16 : i32
    %54 = vector.broadcast %c16_i32_21 : i32 to vector<16x16xi32>
    %55 = arith.cmpi slt, %53, %54 : vector<16x16xi32>
    %56 = arith.andi %51, %55 : vector<16x16xi1>
    %cst_22 = arith.constant 0.000000e+00 : f32
    %57 = vector.broadcast %cst_22 : f32 to vector<16x16xf32>
    %58 = arith.select %56, %46, %57 : vector<16x16xi1>, vector<16x16xf32>
    %59 = arith.addf %31, %58 : vector<16x16xf32>
    %c1_i32_23 = arith.constant 1 : i32
    %60 = tpu.dynamic_rotate %45 by %c1_i32_23 dim 0 : vector<16x16xf32>, i32 -> vector<16x16xf32>
    %61 = tpu.iota {dimensions = array<i32: 0>} : vector<16x16xi32>
    %c-1_i32_24 = arith.constant -1 : i32
    %62 = vector.broadcast %c-1_i32_24 : i32 to vector<16x16xi32>
    %63 = arith.addi %61, %62 : vector<16x16xi32>
    %c0_i32_25 = arith.constant 0 : i32
    %64 = vector.broadcast %c0_i32_25 : i32 to vector<16x16xi32>
    %65 = arith.cmpi sge, %63, %64 : vector<16x16xi32>
    %c-1_i32_26 = arith.constant -1 : i32
    %66 = vector.broadcast %c-1_i32_26 : i32 to vector<16x16xi32>
    %67 = arith.addi %61, %66 : vector<16x16xi32>
    %c16_i32_27 = arith.constant 16 : i32
    %68 = vector.broadcast %c16_i32_27 : i32 to vector<16x16xi32>
    %69 = arith.cmpi slt, %67, %68 : vector<16x16xi32>
    %70 = arith.andi %65, %69 : vector<16x16xi1>
    %cst_28 = arith.constant 0xFF800000 : f32
    %71 = vector.broadcast %cst_28 : f32 to vector<16x16xf32>
    %72 = arith.select %70, %60, %71 : vector<16x16xi1>, vector<16x16xf32>
    %73 = arith.maximumf %45, %72 : vector<16x16xf32>
    %c1_i32_29 = arith.constant 1 : i32
    %74 = tpu.dynamic_rotate %59 by %c1_i32_29 dim 0 : vector<16x16xf32>, i32 -> vector<16x16xf32>
    %75 = tpu.iota {dimensions = array<i32: 0>} : vector<16x16xi32>
    %c-1_i32_30 = arith.constant -1 : i32
    %76 = vector.broadcast %c-1_i32_30 : i32 to vector<16x16xi32>
    %77 = arith.addi %75, %76 : vector<16x16xi32>
    %c0_i32_31 = arith.constant 0 : i32
    %78 = vector.broadcast %c0_i32_31 : i32 to vector<16x16xi32>
    %79 = arith.cmpi sge, %77, %78 : vector<16x16xi32>
    %c-1_i32_32 = arith.constant -1 : i32
    %80 = vector.broadcast %c-1_i32_32 : i32 to vector<16x16xi32>
    %81 = arith.addi %75, %80 : vector<16x16xi32>
    %c16_i32_33 = arith.constant 16 : i32
    %82 = vector.broadcast %c16_i32_33 : i32 to vector<16x16xi32>
    %83 = arith.cmpi slt, %81, %82 : vector<16x16xi32>
    %84 = arith.andi %79, %83 : vector<16x16xi1>
    %cst_34 = arith.constant 0.000000e+00 : f32
    %85 = vector.broadcast %cst_34 : f32 to vector<16x16xf32>
    %86 = arith.select %84, %74, %85 : vector<16x16xi1>, vector<16x16xf32>
    %87 = arith.addf %59, %86 : vector<16x16xf32>
    %c15_i32_35 = arith.constant 15 : i32
    %88 = tpu.dynamic_rotate %45 by %c15_i32_35 dim 0 : vector<16x16xf32>, i32 -> vector<16x16xf32>
    %89 = tpu.iota {dimensions = array<i32: 0>} : vector<16x16xi32>
    %c1_i32_36 = arith.constant 1 : i32
    %90 = vector.broadcast %c1_i32_36 : i32 to vector<16x16xi32>
    %91 = arith.addi %89, %90 : vector<16x16xi32>
    %c0_i32_37 = arith.constant 0 : i32
    %92 = vector.broadcast %c0_i32_37 : i32 to vector<16x16xi32>
    %93 = arith.cmpi sge, %91, %92 : vector<16x16xi32>
    %c1_i32_38 = arith.constant 1 : i32
    %94 = vector.broadcast %c1_i32_38 : i32 to vector<16x16xi32>
    %95 = arith.addi %89, %94 : vector<16x16xi32>
    %c16_i32_39 = arith.constant 16 : i32
    %96 = vector.broadcast %c16_i32_39 : i32 to vector<16x16xi32>
    %97 = arith.cmpi slt, %95, %96 : vector<16x16xi32>
    %98 = arith.andi %93, %97 : vector<16x16xi1>
    %cst_40 = arith.constant 0xFF800000 : f32
    %99 = vector.broadcast %cst_40 : f32 to vector<16x16xf32>
    %100 = arith.select %98, %88, %99 : vector<16x16xi1>, vector<16x16xf32>
    %101 = arith.maximumf %73, %100 : vector<16x16xf32>
    %c15_i32_41 = arith.constant 15 : i32
    %102 = tpu.dynamic_rotate %59 by %c15_i32_41 dim 0 : vector<16x16xf32>, i32 -> vector<16x16xf32>
    %103 = tpu.iota {dimensions = array<i32: 0>} : vector<16x16xi32>
    %c1_i32_42 = arith.constant 1 : i32
    %104 = vector.broadcast %c1_i32_42 : i32 to vector<16x16xi32>
    %105 = arith.addi %103, %104 : vector<16x16xi32>
    %c0_i32_43 = arith.constant 0 : i32
    %106 = vector.broadcast %c0_i32_43 : i32 to vector<16x16xi32>
    %107 = arith.cmpi sge, %105, %106 : vector<16x16xi32>
    %c1_i32_44 = arith.constant 1 : i32
    %108 = vector.broadcast %c1_i32_44 : i32 to vector<16x16xi32>
    %109 = arith.addi %103, %108 : vector<16x16xi32>
    %c16_i32_45 = arith.constant 16 : i32
    %110 = vector.broadcast %c16_i32_45 : i32 to vector<16x16xi32>
    %111 = arith.cmpi slt, %109, %110 : vector<16x16xi32>
    %112 = arith.andi %107, %111 : vector<16x16xi1>
    %cst_46 = arith.constant 0.000000e+00 : f32
    %113 = vector.broadcast %cst_46 : f32 to vector<16x16xf32>
    %114 = arith.select %112, %102, %113 : vector<16x16xi1>, vector<16x16xf32>
    %115 = arith.addf %87, %114 : vector<16x16xf32>
    %cst_47 = arith.constant 0.027777778 : f32
    %116 = vector.broadcast %cst_47 : f32 to vector<16x16xf32>
    %117 = arith.mulf %115, %116 : vector<16x16xf32>
    %cst_48 = arith.constant 0.000000e+00 : f32
    %118 = vector.broadcast %cst_48 : f32 to vector<16x16xf32>
    %c0_49 = arith.constant 0 : index
    %119 = memref.load %arg2[%c0_49] : memref<18xf32, #tpu.memory_space<smem>>
    %120 = vector.broadcast %119 : f32 to vector<16x16xf32>
    %121 = arith.mulf %120, %101 : vector<16x16xf32>
    %c9 = arith.constant 9 : index
    %122 = memref.load %arg2[%c9] : memref<18xf32, #tpu.memory_space<smem>>
    %123 = vector.broadcast %122 : f32 to vector<16x16xf32>
    %124 = arith.mulf %123, %117 : vector<16x16xf32>
    %125 = arith.addf %121, %124 : vector<16x16xf32>
    %c1_i32_50 = arith.constant 1 : i32
    %126 = tpu.dynamic_rotate %125 by %c1_i32_50 dim 0 : vector<16x16xf32>, i32 -> vector<16x16xf32>
    %127 = tpu.iota {dimensions = array<i32: 0>} : vector<16x16xi32>
    %c-1_i32_51 = arith.constant -1 : i32
    %128 = vector.broadcast %c-1_i32_51 : i32 to vector<16x16xi32>
    %129 = arith.addi %127, %128 : vector<16x16xi32>
    %c0_i32_52 = arith.constant 0 : i32
    %130 = vector.broadcast %c0_i32_52 : i32 to vector<16x16xi32>
    %131 = arith.cmpi sge, %129, %130 : vector<16x16xi32>
    %c-1_i32_53 = arith.constant -1 : i32
    %132 = vector.broadcast %c-1_i32_53 : i32 to vector<16x16xi32>
    %133 = arith.addi %127, %132 : vector<16x16xi32>
    %c16_i32_54 = arith.constant 16 : i32
    %134 = vector.broadcast %c16_i32_54 : i32 to vector<16x16xi32>
    %135 = arith.cmpi slt, %133, %134 : vector<16x16xi32>
    %136 = arith.andi %131, %135 : vector<16x16xi1>
    %cst_55 = arith.constant 0.000000e+00 : f32
    %137 = vector.broadcast %cst_55 : f32 to vector<16x16xf32>
    %138 = arith.select %136, %126, %137 : vector<16x16xi1>, vector<16x16xf32>
    %c1_i32_56 = arith.constant 1 : i32
    %139 = tpu.dynamic_rotate %138 by %c1_i32_56 dim 1 : vector<16x16xf32>, i32 -> vector<16x16xf32>
    %140 = tpu.iota {dimensions = array<i32: 1>} : vector<16x16xi32>
    %c-1_i32_57 = arith.constant -1 : i32
    %141 = vector.broadcast %c-1_i32_57 : i32 to vector<16x16xi32>
    %142 = arith.addi %140, %141 : vector<16x16xi32>
    %c0_i32_58 = arith.constant 0 : i32
    %143 = vector.broadcast %c0_i32_58 : i32 to vector<16x16xi32>
    %144 = arith.cmpi sge, %142, %143 : vector<16x16xi32>
    %c-1_i32_59 = arith.constant -1 : i32
    %145 = vector.broadcast %c-1_i32_59 : i32 to vector<16x16xi32>
    %146 = arith.addi %140, %145 : vector<16x16xi32>
    %c16_i32_60 = arith.constant 16 : i32
    %147 = vector.broadcast %c16_i32_60 : i32 to vector<16x16xi32>
    %148 = arith.cmpi slt, %146, %147 : vector<16x16xi32>
    %149 = arith.andi %144, %148 : vector<16x16xi1>
    %cst_61 = arith.constant 0.000000e+00 : f32
    %150 = vector.broadcast %cst_61 : f32 to vector<16x16xf32>
    %151 = arith.select %149, %139, %150 : vector<16x16xi1>, vector<16x16xf32>
    %152 = arith.addf %118, %151 : vector<16x16xf32>
    %c1 = arith.constant 1 : index
    %153 = memref.load %arg2[%c1] : memref<18xf32, #tpu.memory_space<smem>>
    %154 = vector.broadcast %153 : f32 to vector<16x16xf32>
    %155 = arith.mulf %154, %101 : vector<16x16xf32>
    %c10 = arith.constant 10 : index
    %156 = memref.load %arg2[%c10] : memref<18xf32, #tpu.memory_space<smem>>
    %157 = vector.broadcast %156 : f32 to vector<16x16xf32>
    %158 = arith.mulf %157, %117 : vector<16x16xf32>
    %159 = arith.addf %155, %158 : vector<16x16xf32>
    %c1_i32_62 = arith.constant 1 : i32
    %160 = tpu.dynamic_rotate %159 by %c1_i32_62 dim 0 : vector<16x16xf32>, i32 -> vector<16x16xf32>
    %161 = tpu.iota {dimensions = array<i32: 0>} : vector<16x16xi32>
    %c-1_i32_63 = arith.constant -1 : i32
    %162 = vector.broadcast %c-1_i32_63 : i32 to vector<16x16xi32>
    %163 = arith.addi %161, %162 : vector<16x16xi32>
    %c0_i32_64 = arith.constant 0 : i32
    %164 = vector.broadcast %c0_i32_64 : i32 to vector<16x16xi32>
    %165 = arith.cmpi sge, %163, %164 : vector<16x16xi32>
    %c-1_i32_65 = arith.constant -1 : i32
    %166 = vector.broadcast %c-1_i32_65 : i32 to vector<16x16xi32>
    %167 = arith.addi %161, %166 : vector<16x16xi32>
    %c16_i32_66 = arith.constant 16 : i32
    %168 = vector.broadcast %c16_i32_66 : i32 to vector<16x16xi32>
    %169 = arith.cmpi slt, %167, %168 : vector<16x16xi32>
    %170 = arith.andi %165, %169 : vector<16x16xi1>
    %cst_67 = arith.constant 0.000000e+00 : f32
    %171 = vector.broadcast %cst_67 : f32 to vector<16x16xf32>
    %172 = arith.select %170, %160, %171 : vector<16x16xi1>, vector<16x16xf32>
    %173 = arith.addf %152, %172 : vector<16x16xf32>
    %c2 = arith.constant 2 : index
    %174 = memref.load %arg2[%c2] : memref<18xf32, #tpu.memory_space<smem>>
    %175 = vector.broadcast %174 : f32 to vector<16x16xf32>
    %176 = arith.mulf %175, %101 : vector<16x16xf32>
    %c11 = arith.constant 11 : index
    %177 = memref.load %arg2[%c11] : memref<18xf32, #tpu.memory_space<smem>>
    %178 = vector.broadcast %177 : f32 to vector<16x16xf32>
    %179 = arith.mulf %178, %117 : vector<16x16xf32>
    %180 = arith.addf %176, %179 : vector<16x16xf32>
    %c1_i32_68 = arith.constant 1 : i32
    %181 = tpu.dynamic_rotate %180 by %c1_i32_68 dim 0 : vector<16x16xf32>, i32 -> vector<16x16xf32>
    %182 = tpu.iota {dimensions = array<i32: 0>} : vector<16x16xi32>
    %c-1_i32_69 = arith.constant -1 : i32
    %183 = vector.broadcast %c-1_i32_69 : i32 to vector<16x16xi32>
    %184 = arith.addi %182, %183 : vector<16x16xi32>
    %c0_i32_70 = arith.constant 0 : i32
    %185 = vector.broadcast %c0_i32_70 : i32 to vector<16x16xi32>
    %186 = arith.cmpi sge, %184, %185 : vector<16x16xi32>
    %c-1_i32_71 = arith.constant -1 : i32
    %187 = vector.broadcast %c-1_i32_71 : i32 to vector<16x16xi32>
    %188 = arith.addi %182, %187 : vector<16x16xi32>
    %c16_i32_72 = arith.constant 16 : i32
    %189 = vector.broadcast %c16_i32_72 : i32 to vector<16x16xi32>
    %190 = arith.cmpi slt, %188, %189 : vector<16x16xi32>
    %191 = arith.andi %186, %190 : vector<16x16xi1>
    %cst_73 = arith.constant 0.000000e+00 : f32
    %192 = vector.broadcast %cst_73 : f32 to vector<16x16xf32>
    %193 = arith.select %191, %181, %192 : vector<16x16xi1>, vector<16x16xf32>
    %c15_i32_74 = arith.constant 15 : i32
    %194 = tpu.dynamic_rotate %193 by %c15_i32_74 dim 1 : vector<16x16xf32>, i32 -> vector<16x16xf32>
    %195 = tpu.iota {dimensions = array<i32: 1>} : vector<16x16xi32>
    %c1_i32_75 = arith.constant 1 : i32
    %196 = vector.broadcast %c1_i32_75 : i32 to vector<16x16xi32>
    %197 = arith.addi %195, %196 : vector<16x16xi32>
    %c0_i32_76 = arith.constant 0 : i32
    %198 = vector.broadcast %c0_i32_76 : i32 to vector<16x16xi32>
    %199 = arith.cmpi sge, %197, %198 : vector<16x16xi32>
    %c1_i32_77 = arith.constant 1 : i32
    %200 = vector.broadcast %c1_i32_77 : i32 to vector<16x16xi32>
    %201 = arith.addi %195, %200 : vector<16x16xi32>
    %c16_i32_78 = arith.constant 16 : i32
    %202 = vector.broadcast %c16_i32_78 : i32 to vector<16x16xi32>
    %203 = arith.cmpi slt, %201, %202 : vector<16x16xi32>
    %204 = arith.andi %199, %203 : vector<16x16xi1>
    %cst_79 = arith.constant 0.000000e+00 : f32
    %205 = vector.broadcast %cst_79 : f32 to vector<16x16xf32>
    %206 = arith.select %204, %194, %205 : vector<16x16xi1>, vector<16x16xf32>
    %207 = arith.addf %173, %206 : vector<16x16xf32>
    %c3 = arith.constant 3 : index
    %208 = memref.load %arg2[%c3] : memref<18xf32, #tpu.memory_space<smem>>
    %209 = vector.broadcast %208 : f32 to vector<16x16xf32>
    %210 = arith.mulf %209, %101 : vector<16x16xf32>
    %c12 = arith.constant 12 : index
    %211 = memref.load %arg2[%c12] : memref<18xf32, #tpu.memory_space<smem>>
    %212 = vector.broadcast %211 : f32 to vector<16x16xf32>
    %213 = arith.mulf %212, %117 : vector<16x16xf32>
    %214 = arith.addf %210, %213 : vector<16x16xf32>
    %c1_i32_80 = arith.constant 1 : i32
    %215 = tpu.dynamic_rotate %214 by %c1_i32_80 dim 1 : vector<16x16xf32>, i32 -> vector<16x16xf32>
    %216 = tpu.iota {dimensions = array<i32: 1>} : vector<16x16xi32>
    %c-1_i32_81 = arith.constant -1 : i32
    %217 = vector.broadcast %c-1_i32_81 : i32 to vector<16x16xi32>
    %218 = arith.addi %216, %217 : vector<16x16xi32>
    %c0_i32_82 = arith.constant 0 : i32
    %219 = vector.broadcast %c0_i32_82 : i32 to vector<16x16xi32>
    %220 = arith.cmpi sge, %218, %219 : vector<16x16xi32>
    %c-1_i32_83 = arith.constant -1 : i32
    %221 = vector.broadcast %c-1_i32_83 : i32 to vector<16x16xi32>
    %222 = arith.addi %216, %221 : vector<16x16xi32>
    %c16_i32_84 = arith.constant 16 : i32
    %223 = vector.broadcast %c16_i32_84 : i32 to vector<16x16xi32>
    %224 = arith.cmpi slt, %222, %223 : vector<16x16xi32>
    %225 = arith.andi %220, %224 : vector<16x16xi1>
    %cst_85 = arith.constant 0.000000e+00 : f32
    %226 = vector.broadcast %cst_85 : f32 to vector<16x16xf32>
    %227 = arith.select %225, %215, %226 : vector<16x16xi1>, vector<16x16xf32>
    %228 = arith.addf %207, %227 : vector<16x16xf32>
    %c4 = arith.constant 4 : index
    %229 = memref.load %arg2[%c4] : memref<18xf32, #tpu.memory_space<smem>>
    %230 = vector.broadcast %229 : f32 to vector<16x16xf32>
    %231 = arith.mulf %230, %101 : vector<16x16xf32>
    %c13 = arith.constant 13 : index
    %232 = memref.load %arg2[%c13] : memref<18xf32, #tpu.memory_space<smem>>
    %233 = vector.broadcast %232 : f32 to vector<16x16xf32>
    %234 = arith.mulf %233, %117 : vector<16x16xf32>
    %235 = arith.addf %231, %234 : vector<16x16xf32>
    %236 = arith.addf %228, %235 : vector<16x16xf32>
    %c5 = arith.constant 5 : index
    %237 = memref.load %arg2[%c5] : memref<18xf32, #tpu.memory_space<smem>>
    %238 = vector.broadcast %237 : f32 to vector<16x16xf32>
    %239 = arith.mulf %238, %101 : vector<16x16xf32>
    %c14 = arith.constant 14 : index
    %240 = memref.load %arg2[%c14] : memref<18xf32, #tpu.memory_space<smem>>
    %241 = vector.broadcast %240 : f32 to vector<16x16xf32>
    %242 = arith.mulf %241, %117 : vector<16x16xf32>
    %243 = arith.addf %239, %242 : vector<16x16xf32>
    %c15_i32_86 = arith.constant 15 : i32
    %244 = tpu.dynamic_rotate %243 by %c15_i32_86 dim 1 : vector<16x16xf32>, i32 -> vector<16x16xf32>
    %245 = tpu.iota {dimensions = array<i32: 1>} : vector<16x16xi32>
    %c1_i32_87 = arith.constant 1 : i32
    %246 = vector.broadcast %c1_i32_87 : i32 to vector<16x16xi32>
    %247 = arith.addi %245, %246 : vector<16x16xi32>
    %c0_i32_88 = arith.constant 0 : i32
    %248 = vector.broadcast %c0_i32_88 : i32 to vector<16x16xi32>
    %249 = arith.cmpi sge, %247, %248 : vector<16x16xi32>
    %c1_i32_89 = arith.constant 1 : i32
    %250 = vector.broadcast %c1_i32_89 : i32 to vector<16x16xi32>
    %251 = arith.addi %245, %250 : vector<16x16xi32>
    %c16_i32_90 = arith.constant 16 : i32
    %252 = vector.broadcast %c16_i32_90 : i32 to vector<16x16xi32>
    %253 = arith.cmpi slt, %251, %252 : vector<16x16xi32>
    %254 = arith.andi %249, %253 : vector<16x16xi1>
    %cst_91 = arith.constant 0.000000e+00 : f32
    %255 = vector.broadcast %cst_91 : f32 to vector<16x16xf32>
    %256 = arith.select %254, %244, %255 : vector<16x16xi1>, vector<16x16xf32>
    %257 = arith.addf %236, %256 : vector<16x16xf32>
    %c6 = arith.constant 6 : index
    %258 = memref.load %arg2[%c6] : memref<18xf32, #tpu.memory_space<smem>>
    %259 = vector.broadcast %258 : f32 to vector<16x16xf32>
    %260 = arith.mulf %259, %101 : vector<16x16xf32>
    %c15 = arith.constant 15 : index
    %261 = memref.load %arg2[%c15] : memref<18xf32, #tpu.memory_space<smem>>
    %262 = vector.broadcast %261 : f32 to vector<16x16xf32>
    %263 = arith.mulf %262, %117 : vector<16x16xf32>
    %264 = arith.addf %260, %263 : vector<16x16xf32>
    %c15_i32_92 = arith.constant 15 : i32
    %265 = tpu.dynamic_rotate %264 by %c15_i32_92 dim 0 : vector<16x16xf32>, i32 -> vector<16x16xf32>
    %266 = tpu.iota {dimensions = array<i32: 0>} : vector<16x16xi32>
    %c1_i32_93 = arith.constant 1 : i32
    %267 = vector.broadcast %c1_i32_93 : i32 to vector<16x16xi32>
    %268 = arith.addi %266, %267 : vector<16x16xi32>
    %c0_i32_94 = arith.constant 0 : i32
    %269 = vector.broadcast %c0_i32_94 : i32 to vector<16x16xi32>
    %270 = arith.cmpi sge, %268, %269 : vector<16x16xi32>
    %c1_i32_95 = arith.constant 1 : i32
    %271 = vector.broadcast %c1_i32_95 : i32 to vector<16x16xi32>
    %272 = arith.addi %266, %271 : vector<16x16xi32>
    %c16_i32_96 = arith.constant 16 : i32
    %273 = vector.broadcast %c16_i32_96 : i32 to vector<16x16xi32>
    %274 = arith.cmpi slt, %272, %273 : vector<16x16xi32>
    %275 = arith.andi %270, %274 : vector<16x16xi1>
    %cst_97 = arith.constant 0.000000e+00 : f32
    %276 = vector.broadcast %cst_97 : f32 to vector<16x16xf32>
    %277 = arith.select %275, %265, %276 : vector<16x16xi1>, vector<16x16xf32>
    %c1_i32_98 = arith.constant 1 : i32
    %278 = tpu.dynamic_rotate %277 by %c1_i32_98 dim 1 : vector<16x16xf32>, i32 -> vector<16x16xf32>
    %279 = tpu.iota {dimensions = array<i32: 1>} : vector<16x16xi32>
    %c-1_i32_99 = arith.constant -1 : i32
    %280 = vector.broadcast %c-1_i32_99 : i32 to vector<16x16xi32>
    %281 = arith.addi %279, %280 : vector<16x16xi32>
    %c0_i32_100 = arith.constant 0 : i32
    %282 = vector.broadcast %c0_i32_100 : i32 to vector<16x16xi32>
    %283 = arith.cmpi sge, %281, %282 : vector<16x16xi32>
    %c-1_i32_101 = arith.constant -1 : i32
    %284 = vector.broadcast %c-1_i32_101 : i32 to vector<16x16xi32>
    %285 = arith.addi %279, %284 : vector<16x16xi32>
    %c16_i32_102 = arith.constant 16 : i32
    %286 = vector.broadcast %c16_i32_102 : i32 to vector<16x16xi32>
    %287 = arith.cmpi slt, %285, %286 : vector<16x16xi32>
    %288 = arith.andi %283, %287 : vector<16x16xi1>
    %cst_103 = arith.constant 0.000000e+00 : f32
    %289 = vector.broadcast %cst_103 : f32 to vector<16x16xf32>
    %290 = arith.select %288, %278, %289 : vector<16x16xi1>, vector<16x16xf32>
    %291 = arith.addf %257, %290 : vector<16x16xf32>
    %c7 = arith.constant 7 : index
    %292 = memref.load %arg2[%c7] : memref<18xf32, #tpu.memory_space<smem>>
    %293 = vector.broadcast %292 : f32 to vector<16x16xf32>
    %294 = arith.mulf %293, %101 : vector<16x16xf32>
    %c16 = arith.constant 16 : index
    %295 = memref.load %arg2[%c16] : memref<18xf32, #tpu.memory_space<smem>>
    %296 = vector.broadcast %295 : f32 to vector<16x16xf32>
    %297 = arith.mulf %296, %117 : vector<16x16xf32>
    %298 = arith.addf %294, %297 : vector<16x16xf32>
    %c15_i32_104 = arith.constant 15 : i32
    %299 = tpu.dynamic_rotate %298 by %c15_i32_104 dim 0 : vector<16x16xf32>, i32 -> vector<16x16xf32>
    %300 = tpu.iota {dimensions = array<i32: 0>} : vector<16x16xi32>
    %c1_i32_105 = arith.constant 1 : i32
    %301 = vector.broadcast %c1_i32_105 : i32 to vector<16x16xi32>
    %302 = arith.addi %300, %301 : vector<16x16xi32>
    %c0_i32_106 = arith.constant 0 : i32
    %303 = vector.broadcast %c0_i32_106 : i32 to vector<16x16xi32>
    %304 = arith.cmpi sge, %302, %303 : vector<16x16xi32>
    %c1_i32_107 = arith.constant 1 : i32
    %305 = vector.broadcast %c1_i32_107 : i32 to vector<16x16xi32>
    %306 = arith.addi %300, %305 : vector<16x16xi32>
    %c16_i32_108 = arith.constant 16 : i32
    %307 = vector.broadcast %c16_i32_108 : i32 to vector<16x16xi32>
    %308 = arith.cmpi slt, %306, %307 : vector<16x16xi32>
    %309 = arith.andi %304, %308 : vector<16x16xi1>
    %cst_109 = arith.constant 0.000000e+00 : f32
    %310 = vector.broadcast %cst_109 : f32 to vector<16x16xf32>
    %311 = arith.select %309, %299, %310 : vector<16x16xi1>, vector<16x16xf32>
    %312 = arith.addf %291, %311 : vector<16x16xf32>
    %c8 = arith.constant 8 : index
    %313 = memref.load %arg2[%c8] : memref<18xf32, #tpu.memory_space<smem>>
    %314 = vector.broadcast %313 : f32 to vector<16x16xf32>
    %315 = arith.mulf %314, %101 : vector<16x16xf32>
    %c17 = arith.constant 17 : index
    %316 = memref.load %arg2[%c17] : memref<18xf32, #tpu.memory_space<smem>>
    %317 = vector.broadcast %316 : f32 to vector<16x16xf32>
    %318 = arith.mulf %317, %117 : vector<16x16xf32>
    %319 = arith.addf %315, %318 : vector<16x16xf32>
    %c15_i32_110 = arith.constant 15 : i32
    %320 = tpu.dynamic_rotate %319 by %c15_i32_110 dim 0 : vector<16x16xf32>, i32 -> vector<16x16xf32>
    %321 = tpu.iota {dimensions = array<i32: 0>} : vector<16x16xi32>
    %c1_i32_111 = arith.constant 1 : i32
    %322 = vector.broadcast %c1_i32_111 : i32 to vector<16x16xi32>
    %323 = arith.addi %321, %322 : vector<16x16xi32>
    %c0_i32_112 = arith.constant 0 : i32
    %324 = vector.broadcast %c0_i32_112 : i32 to vector<16x16xi32>
    %325 = arith.cmpi sge, %323, %324 : vector<16x16xi32>
    %c1_i32_113 = arith.constant 1 : i32
    %326 = vector.broadcast %c1_i32_113 : i32 to vector<16x16xi32>
    %327 = arith.addi %321, %326 : vector<16x16xi32>
    %c16_i32_114 = arith.constant 16 : i32
    %328 = vector.broadcast %c16_i32_114 : i32 to vector<16x16xi32>
    %329 = arith.cmpi slt, %327, %328 : vector<16x16xi32>
    %330 = arith.andi %325, %329 : vector<16x16xi1>
    %cst_115 = arith.constant 0.000000e+00 : f32
    %331 = vector.broadcast %cst_115 : f32 to vector<16x16xf32>
    %332 = arith.select %330, %320, %331 : vector<16x16xi1>, vector<16x16xf32>
    %c15_i32_116 = arith.constant 15 : i32
    %333 = tpu.dynamic_rotate %332 by %c15_i32_116 dim 1 : vector<16x16xf32>, i32 -> vector<16x16xf32>
    %334 = tpu.iota {dimensions = array<i32: 1>} : vector<16x16xi32>
    %c1_i32_117 = arith.constant 1 : i32
    %335 = vector.broadcast %c1_i32_117 : i32 to vector<16x16xi32>
    %336 = arith.addi %334, %335 : vector<16x16xi32>
    %c0_i32_118 = arith.constant 0 : i32
    %337 = vector.broadcast %c0_i32_118 : i32 to vector<16x16xi32>
    %338 = arith.cmpi sge, %336, %337 : vector<16x16xi32>
    %c1_i32_119 = arith.constant 1 : i32
    %339 = vector.broadcast %c1_i32_119 : i32 to vector<16x16xi32>
    %340 = arith.addi %334, %339 : vector<16x16xi32>
    %c16_i32_120 = arith.constant 16 : i32
    %341 = vector.broadcast %c16_i32_120 : i32 to vector<16x16xi32>
    %342 = arith.cmpi slt, %340, %341 : vector<16x16xi32>
    %343 = arith.andi %338, %342 : vector<16x16xi1>
    %cst_121 = arith.constant 0.000000e+00 : f32
    %344 = vector.broadcast %cst_121 : f32 to vector<16x16xf32>
    %345 = arith.select %343, %333, %344 : vector<16x16xi1>, vector<16x16xf32>
    %346 = arith.addf %312, %345 : vector<16x16xf32>
    %c0_122 = arith.constant 0 : index
    %347 = memref.load %arg3[%c0_122] : memref<1xf32, #tpu.memory_space<smem>>
    %348 = vector.broadcast %347 : f32 to vector<16x16xf32>
    %349 = arith.addf %346, %348 : vector<16x16xf32>
    %c0_123 = arith.constant 0 : index
    %c0_124 = arith.constant 0 : index
    %c0_125 = arith.constant 0 : index
    %350 = vector.load %arg4[%c0_123, %c0_124, %c0_125] : memref<1x16x16xf32, #tpu.memory_space<vmem>>, vector<1x16x16xf32>
    %351 = vector.shape_cast %350 : vector<1x16x16xf32> to vector<16x16xf32>
    %352 = vector.shape_cast %349 : vector<16x16xf32> to vector<1x16x16xf32>
    tpu.vector_store %arg4[%c0_123, %c0_124, %c0_125], %352 {strides = array<i32>} : memref<1x16x16xf32, #tpu.memory_space<vmem>>, vector<1x16x16xf32>,
    return
  }
  func.func @transform_0(%arg0: i32) -> (i32, i32, i32, i32) {
    %c0_i32 = arith.constant 0 : i32
    %c0_i32_0 = arith.constant 0 : i32
    %c0_i32_1 = arith.constant 0 : i32
    %c0_i32_2 = arith.constant 0 : i32
    return %arg0, %c0_i32, %c0_i32_0, %c0_i32_1 : i32, i32, i32, i32
  }
  func.func @transform_1(%arg0: i32) -> i32 {
    %c0_i32 = arith.constant 0 : i32
    %c0_i32_0 = arith.constant 0 : i32
    return %c0_i32 : i32
  }
  func.func @transform_2(%arg0: i32) -> i32 {
    %c0_i32 = arith.constant 0 : i32
    %c0_i32_0 = arith.constant 0 : i32
    return %c0_i32 : i32
  }
  func.func @transform_3(%arg0: i32) -> (i32, i32, i32) {
    %c0_i32 = arith.constant 0 : i32
    %c0_i32_0 = arith.constant 0 : i32
    %c0_i32_1 = arith.constant 0 : i32
    return %arg0, %c0_i32, %c0_i32_0 : i32, i32, i32
  }
}

</mosaic_0001>

<bundles_post_ra>
// kernel: tpu_custom_call.1
= control target key start
LH: loop header
LB: loop body
LE: loop exit
PB: predicated region body
PF: predicated region fallthrough
CT: control target
= control target key end

     0   :  { %s1648_s0 = inlined_call_operand.hbm [shape: f32[2,4,16,16], index: 0, kind: input, shape index: {}]   ;;  %s1649_s1 = inlined_call_operand.vmem [shape: f32[18], index: 1, kind: input, shape index: {}]   ;;  %s1650_s2 = inlined_call_operand.<no memory space> [shape: f32[1], index: 2, kind: input, shape index: {}]   ;;  %s1651_s3 = inlined_call_operand.hbm [shape: f32[2,16,16], index: 3, kind: output, shape index: {}]  }
   0x1   :  { %8 = sst [smem:[#allocation2]] %s1650_s2 }
   0x2   :  { %9 = vsyncpa [#allocation4], 0 }
   0x3   :  { %11 = vsyncpa [#allocation4 + $0x1], 0 }
   0x4   :  { %12 = vsyncpa [#allocation6], 0 }
   0x5   :  { %13 = vsyncpa [#allocation5], 0 }
   0x6   :  { %15 = vsyncpa [#allocation5 + $0x1], 0  ;;  %s1005_s14 = smov 0   ;;  %s1007_s15 = smov 0  }
   0x7   :  { %s1009_s16 = smov 0   ;;  %s1011_s17 = smov 0  }
   0x8 LB: > { %s1026_s2 = sadd.s32 4294967295, %s970_s17   ;;  %s756_s18 = sadd.s32 4294967294, %s970_s17   ;;  %s970_s17 = sphi %s1011_s17, %s1673_s17   ;;  %s966_s16 = sphi %s1009_s16, %s1672_s16   ;;  %s962_s15 = sphi %s1007_s15, %s1671_s15   ;;  %s958_s14 = sphi %s1005_s14, %s1670_s14  }
   0x9   : > { %s1030_s19 = sadd.s32 1, %s970_s17   ;;  %s28_s20 = sadd.s32 1, %s966_s16 }
   0xa   : > { %s25_s21 = ssub.s32 %s970_s17, %s1030_s19  ;;  %p35_p0 = scmp.ne.s32.totalorder %s966_s16, %s962_s15 }
   0xb   : > { %p26_p1 = scmp.eq.s32.totalorder %s25_s21, 0  ;;  %p36_p2 = scmp.eq.s32.totalorder %s970_s17, 0 }
   0xc   : > { %p41_p3 = scmp.ne.s32.totalorder %s962_s15, %s958_s14  ;;  %p1653_p4 = scmp.eq.s32.totalorder %s1026_s2, 0 }
   0xd   : > { %s1042_s22 = scalar_select %p26_p1, %s966_s16, %s28_s20  }
   0xe   : > { %p1044_p5 = por %p36_p2, %p35_p0  ;;  %p1050_p6 = por %p1653_p4, %p41_p3 }
   0xf   : > { %p107_p7 = scmp.eq.s32.totalorder %s1026_s2, 1  ;;  %p113_p8 = scmp.eq.s32.totalorder %s756_s18, 1 }
  0x10   : > { %s1656_s24 = scalar_select %p1050_p6, 1, 0 }
  0x11   : > { %p757_p9 = scmp.ge.s32.totalorder %s970_s17, 1  ;;  %p120_p10 = scmp.lt.s32.totalorder %s970_s17, 3 }
  0x12   : > { %p1057_p11 = por %p107_p7, %p35_p0  ;;  %p1061_p12 = por %p113_p8, %p41_p3 }
  0x13   : > { %p1065_p13 = pnand %p757_p9, %p120_p10  ;;  %s133_s30 = sshll.u32 %s1649_s1, 4  ;;  %s134_s30 = int_to_ptr.vmem [resolvable:$true] %s133_s30 }
  0x14   : > { %s1657_s25 = scalar_select %p1057_p11, 1, 0 }
  0x15   : > { %s1658_s26 = scalar_select %p1061_p12, 1, 0 }
  0x16   : > { %p799_p1 = pneg %p1065_p13  ;;  %p812_p2 = scmp.lt.s32.totalorder %s970_s17, 2 }
  0x17   : > { %s147_s5 = sand.u32 1, %s966_s16   ;;  %s855_s8 = scalar_lea.vmem %s134_s30, 16 }
  0x18   : > { %p1078_p7 = pnand %p799_p1, %p1653_p4  ;;  %p1085_p3 = pnand %p812_p2, %p1044_p5 }
  0x19   : > { %s760_s7 = sshll.u32 %s147_s5, 6  ;;  %p856_p8 = scmp.ne.s32.totalorder %s134_s30, %s855_s8 }
  0x1a   : > { %p857_p9 = pneg %p1078_p7  ;;  %p863_p12 = scmp.lt.s32.totalorder %s134_s30, %s134_s30 }
  0x1b   : > { %p864_p11 = scmp.lt.s32.totalorder %s855_s8, %s855_s8 }
  0x1c   : > { %p858_p10 = pnand %p857_p9, %p856_p8 }
  0x1d   : > { %p865_p1 = por %p864_p11, %p863_p12 }
  0x1e   : > { %p859_p0 = pneg %p858_p10 }
  0x20   : > { %p866_p4 = pnand %p865_p1, %p859_p0 }
  0x22   : > { %869 = shalt.err (!%p866_p4)
}
  0x23   : > { %s972_s9 = smov [#allocation7]   ;;  %s789_s10 = sshll.u32 %s970_s17, 10 }
  0x24   : > { %802 = dma.vmem_to_smem (!%p1078_p7), %s134_s30, 16, %s972_s9, [#allocation6]  }
  0x25   : > { %s151_s11 = scalar_lea.vmem [#allocation3], %s760_s7  ;;  %s1097_s20 = scalar_lea.hbm %s1648_s0, %s789_s10 }
  0x26   : > { %s158_s12 = sshll.u32 %s151_s11, 4  ;;  %s1101_s21 = scalar_lea.sflag [#allocation4], %s147_s5  ;;  %s1099_s12 = int_to_ptr.vmem [resolvable:$true] %s158_s12 }
  0x27   : > { %s870_s23 = scalar_lea.hbm %s1097_s20, 1024  ;;  %p872_p5 = pneg %p1085_p3 }
  0x28   : > { %p871_p4 = scmp.ne.s32.totalorder %s1097_s20, %s870_s23  ;;  %s875_s30 = scalar_lea.hbm %s1648_s0, 2048 }
  0x29   : > { %p876_p0 = scmp.lt.u32.totalorder %s1097_s20, %s1648_s0  ;;  %p877_p2 = scmp.lt.u32.totalorder %s875_s30, %s870_s23 }
  0x2a   : > { %p873_p11 = pnand %p872_p5, %p871_p4  ;;  %p879_p8 = scmp.lt.u32.totalorder %s870_s23, %s1097_s20 }
  0x2b   : > { %p878_p7 = por %p877_p2, %p876_p0 }
  0x2c   : > { %p874_p12 = pneg %p873_p11 }
  0x2d   : > { %p880_p9 = por %p879_p8, %p878_p7 }
  0x2f   : > { %p881_p10 = pnand %p880_p9, %p874_p12 }
  0x31   : > { %884 = shalt.err (!%p881_p10)
}
  0x32   : > { %s885_s5 = scalar_lea.vmem %s1099_s12, 1024  ;;  %s973_s8 = smov [#allocation3]  }
  0x33   : > { %p886_p1 = scmp.ne.s32.totalorder %s1099_s12, %s885_s5  ;;  %s890_s9 = sshll.u32 %s973_s8, 4  ;;  %s891_s9 = int_to_ptr.vmem [resolvable:$false] %s890_s9 }
  0x34   : > { %s892_s10 = scalar_lea.vmem %s891_s9, 2048  ;;  %p893_p6 = scmp.lt.s32.totalorder %s1099_s12, %s891_s9 }
  0x35   : > { %p888_p4 = pnand %p886_p1, %p872_p5  ;;  %p894_p0 = scmp.lt.s32.totalorder %s892_s10, %s885_s5 }
  0x37   : > { %p889_p11 = pneg %p888_p4  ;;  %p895_p2 = por %p894_p0, %p893_p6 }
  0x39   : > { %p896_p7 = pnand %p895_p2, %p889_p11 }
  0x3b   : > { %899 = shalt.err (!%p896_p7)
}
  0x3c   : > { %s974_s11 = smov 128   ;;  %s975_s13 = smov 8  }
  0x3d   : > { %806 = dma.hbm_to_vmem [thread:$0]  (!%p1085_p3), %s1097_s20, 1024, %s1099_s12, %s1101_s21, %s974_s11, %s974_s11, %s975_s13  }
  0x3e   : > { %170 = sbr.rel (%p1065_p13) target bundleno = 853 (0x355), region = 32  ;;  %s1132_s18 = sand.u32 (!%p1065_p13), 1, %s962_s15  }
  0x3f   : > { %s764_s23 = sshll.u32 (!%p1065_p13), %s1132_s18, 6  ;;  %s173_s28 = scalar_lea.sflag (!%p1065_p13), [#allocation4], %s1132_s18 }
  0x40   : > { %s176_s29 = scalar_lea.vmem (!%p1065_p13), [#allocation3], %s764_s23  ;;  %p1662_p6 = scmp.ne.s32.totalorder (!%p1065_p13), %s1656_s24, 0 }
  0x45   : > { %945 = dma.done.wait (%p1662_p6), %s173_s28, 1024  }
  0x46   : > { %947 = vsyncadd (%p1662_p6), %s173_s28, 4294966272  ;;  %p1663_p5 = scmp.eq.s32.totalorder %s1026_s2, 0 }
  0x48   : > { %949 = dma.done.wait (%p1663_p5), [#allocation6], 16   ;;  %p1664_p3 = pmov %p1663_p5 }
  0x4a   : > { %951 = vsyncadd (%p1664_p3), [#allocation6], 4294967280 }
  0x4b   : > { %185 = sfence }
  0x4c   : > { %v204_v0 = vld [vmem:[%s176_s29] sm:$0xff]  ;;  %v206_v1 = vld [vmem:[%s176_s29 + $0x10] sm:$0xff]  ;;  %vm212_vm0 = vcmask 130048   ;;  %v205_v7 = vld [vmem:[%s176_s29 + $0x8] sm:$0xff]  ;;  %s976_s24 = smov 16   ;;  %vm241_vm1 = vcmask 1047680   ;;  %v254_v52 = vlaneseq }
  0x4d   : > { %v208_v2 = vld [vmem:[%s176_s29 + $0x20] sm:$0xff]  ;;  %v210_v3 = vld [vmem:[%s176_s29 + $0x30] sm:$0xff]  ;;  %v227_v4 = vsel %vm212_vm0, %v204_v0, 0.0  ;;  %v228_v5 = vsel %vm212_vm0, %v206_v1, 0.0  ;;  %v207_v8 = vld [vmem:[%s176_s29 + $0x18] sm:$0xff]  ;;  %v234_v13 = vsel %vm212_vm0, %v205_v7, 0.0 }
  0x4e   : > { %v230_v6 = vsel %vm212_vm0, %v208_v2, 0.0  ;;  %v229_v9 = vadd.f32 %v228_v5, %v227_v4  ;;  %v232_v10 = vsel %vm212_vm0, %v210_v3, 0.0  ;;  %v209_v11 = vld [vmem:[%s176_s29 + $0x28] sm:$0xff]  ;;  %v211_v12 = vld [vmem:[%s176_s29 + $0x38] sm:$0xff]  ;;  %v235_v14 = vsel %vm212_vm0, %v207_v8, 0.0  ;;  %s977_s27 = smov 113  }
  0x4f   : > { %v236_v15 = vadd.f32 %v235_v14, %v234_v13  ;;  %v237_v16 = vsel %vm212_vm0, %v209_v11, 0.0  ;;  %v239_v17 = vsel %vm212_vm0, %v211_v12, 0.0  ;;  %v213_v18 = vsel %vm212_vm0, %v204_v0, -inf  ;;  %s978_s6 = smov 127   ;;  %s1213_s12 = sld [smem:[#allocation7 + $0xc]] }
  0x50   : > { %v231_v19 = vadd.f32 %v230_v6, %v229_v9  ;;  %v214_v20 = vsel %vm212_vm0, %v206_v1, -inf  ;;  %v215_v21 = vsel %vm212_vm0, %v208_v2, -inf  ;;  %v217_v22 = vsel %vm212_vm0, %v210_v3, -inf  ;;  %s1218_s20 = sld [smem:[#allocation7 + $0x9]]  ;;  %s1220_s21 = sld [smem:[#allocation7 + $0xb]] }
  0x51   : > { %v238_v23 = vadd.f32 %v237_v16, %v236_v15  ;;  %v216_v24 = vmax.f32 %v213_v18, %v215_v21  ;;  %v218_v25 = vmax.f32 %v214_v20, %v217_v22  ;;  %v220_v26 = vsel %vm212_vm0, %v205_v7, -inf  ;;  %s1222_s30 = sld [smem:[#allocation7 + $0x3]]  ;;  %s1224_s4 = sld [smem:[#allocation7 + $0xe]] }
  0x52   : > { %v1157_v27 = vadd.f32 %v232_v10, %v231_v19  ;;  %v221_v28 = vsel %vm212_vm0, %v207_v8, -inf  ;;  %v222_v29 = vsel %vm212_vm0, %v209_v11, -inf  ;;  %v224_v30 = vsel %vm212_vm0, %v211_v12, -inf  ;;  %s1236_s7 = sld [smem:[#allocation7]]  ;;  %s1238_s5 = sld [smem:[#allocation7 + $0x2]] }
  0x53   : > { %v1162_v31 = vmax.f32 %v216_v24, %v218_v25  ;;  %v223_v32 = vmax.f32 %v220_v26, %v222_v29  ;;  %v225_v33 = vmax.f32 %v221_v28, %v224_v30  ;;  %v1166_v34 = vadd.f32 %v239_v17, %v238_v23  ;;  %s1240_s8 = sld [smem:[#allocation7 + $0x5]]  ;;  %s1248_s9 = sld [smem:[#allocation7 + $0x6]] }
  0x54   : > { %272 = vrot.lane.b32.xlu0 %v1157_v27, %s976_s24  ;;  %v255_v53 = vand.u32 127, %v254_v52  ;;  %v1204_v56 = vshrl.u32 %v254_v52, 7  ;;  %s1250_s10 = sld [smem:[#allocation7 + $0xf]]  ;;  %s1262_s11 = sld [smem:[#allocation7 + $0x8]] }
  0x55   : > { %242 = vrot.lane.b32.xlu1 %v1162_v31, %s976_s24  ;;  %v1170_v35 = vmax.f32 %v223_v32, %v225_v33  ;;  %v478_v13 = vstv %s1213_s12  ;;  %s1264_s13 = sld [smem:[#allocation7 + $0x11]]  ;;  %s1269_s23 = sld [smem:[#allocation7 + $0xa]] }
  0x56   : > { %v256_v54 = vadd.s32 4294967295, %v255_v53  ;;  %v1206_v57 = vadd.s32 1, %v255_v53  ;;  %v327_v60 = vadd.s32 8, %v1204_v56  ;;  %v1227_v1 = vadd.s32 4294967295, %v1204_v56  ;;  %s1276_s28 = sld [smem:[#allocation7 + $0x1]]  ;;  %s1278_s29 = sld [smem:[#allocation7 + $0xd]] }
  0x57   : > { %vm324_vm6 = vcmp.lt.s32.totalorder %v1204_v56, 1  ;;  %vm350_vm8 = vcmp.lt.s32.totalorder %v1204_v56, 7  ;;  %v380_v17 = vstv %s1218_s20  ;;  %v474_v19 = vstv %s1222_s30  ;;  %s1287_s20 = sld [smem:[#allocation7 + $0x4]]  ;;  %s1299_s30 = sld [smem:[#allocation7 + $0x10]] }
  0x58   : > { %275 = vrot.lane.b32.xlu0 %v1166_v34, %s976_s24  ;;  %vm257_vm2 = vcmp.ge.s32.totalorder %v256_v54, 0  ;;  %vm258_vm3 = vcmp.lt.s32.totalorder %v256_v54, 16  ;;  %vm298_vm5 = vcmp.lt.s32.totalorder %v1206_v57, 16  ;;  %v1229_v2 = vadd.s32 1, %v327_v60  ;;  %p1667_p12 = scmp.ne.s32.totalorder %s1657_s25, 0 }
  0x59   : > { %245 = vrot.lane.b32.xlu1 %v1170_v35, %s976_s24  ;;  %vm1209_vm4 = vmand %vm257_vm2, %vm258_vm3  ;;  %vm330_vm7 = vcmp.ge.s32.totalorder %v1227_v1, 0  ;;  %v438_v20 = vstv %s1220_s21  ;;  %v524_v21 = vstv %s1224_s4  ;;  %v376_v29 = vstv %s1236_s7  ;;  %s1308_s7 = sld [smem:[#allocation7 + $0x7]] }
  0x5a   : > { %vm358_vm9 = vcmp.lt.s32.totalorder %v1229_v2, 16  ;;  %v434_v30 = vstv %s1238_s5 }
  0x5b   : > { %v420_v54 = vstv %s1269_s23 }
  0xc6   : > { %v273_v36 = vpop.permute.xlu0 %272 }
  0xc7   : > { %v274_v37 = vsel %vm241_vm1, %v273_v36, %v1157_v27  ;;  %v243_v38 = vpop.permute.xlu1 %242 }
  0xc8   : > { %278 = vrot.lane.b32.xlu0 %v274_v37, %s976_s24  ;;  %v244_v39 = vsel %vm241_vm1, %v243_v38, %v1162_v31 }
  0xca   : > { %v276_v40 = vpop.permute.xlu0 %275 }
  0xcb   : > { %v277_v41 = vsel %vm241_vm1, %v276_v40, %v1166_v34  ;;  %v246_v42 = vpop.permute.xlu1 %245 }
  0xcc   : > { %280 = vrot.lane.b32.xlu1 %v277_v41, %s976_s24  ;;  %248 = vrot.lane.b32.xlu0 %v244_v39, %s976_s24  ;;  %v247_v43 = vsel %vm241_vm1, %v246_v42, %v1170_v35  ;;  %v554_v41 = vstv %s1248_s9  ;;  %v558_v42 = vstv %s1250_s10  ;;  %s979_s10 = smov [#allocation8]  }
  0xd0   : > { %250 = vrot.lane.b32.xlu1 %v247_v43, %s976_s24 }
 0x13a   : > { %v279_v44 = vpop.permute.xlu0 %278 }
 0x13b   : > { %v282_v49 = vsel %vm241_vm1, %v279_v44, %v1157_v27 }
 0x13e   : > { %v249_v45 = vpop.permute.xlu0 %248  ;;  %v281_v46 = vpop.permute.xlu1 %280 }
 0x13f   : > { %v252_v47 = vsel %vm241_vm1, %v249_v45, %v1162_v31  ;;  %v283_v51 = vsel %vm241_vm1, %v281_v46, %v1166_v34 }
 0x140   : > { %262 = vrot.lane.b32.xlu0 %v252_v47, %s977_s27 }
 0x142   : > { %v251_v48 = vpop.permute.xlu1 %250 }
 0x143   : > { %v253_v50 = vsel %vm241_vm1, %v251_v48, %v1170_v35 }
 0x144   : > { %286 = vrot.lane.b32.xlu0 %v282_v49, %s977_s27  ;;  %264 = vrot.lane.b32.xlu1 %v253_v50, %s977_s27 }
 0x148   : > { %310 = vrot.lane.b32.xlu0 %v282_v49, %s978_s6  ;;  %288 = vrot.lane.b32.xlu1 %v283_v51, %s977_s27  ;;  %v612_v49 = vstv %s1262_s11  ;;  %s904_s11 = sshll.u32 %s979_s10, 4  ;;  %s905_s11 = int_to_ptr.vmem [resolvable:$false] %s904_s11 }
 0x14c   : > { %300 = vrot.lane.b32.xlu0 %v252_v47, %s978_s6  ;;  %312 = vrot.lane.b32.xlu1 %v283_v51, %s978_s6 }
 0x150   : > { %302 = vrot.lane.b32.xlu1 %v253_v50, %s978_s6  ;;  %v616_v50 = vstv %s1264_s13  ;;  %s906_s13 = scalar_lea.vmem %s905_s11, 512 }
 0x1b2   : > { %v263_v55 = vpop.permute.xlu0 %262 }
 0x1b3   : > { %v268_v6 = vsel %vm1209_vm4, %v263_v55, -inf }
 0x1b4   : > { %v270_v14 = vmax.f32 %v1162_v31, %v268_v6 }
 0x1b6   : > { %v287_v58 = vpop.permute.xlu0 %286  ;;  %v265_v59 = vpop.permute.xlu1 %264 }
 0x1b7   : > { %v292_v62 = vsel %vm1209_vm4, %v287_v58, 0.0  ;;  %v269_v15 = vsel %vm1209_vm4, %v265_v59, -inf }
 0x1b8   : > { %v294_v3 = vadd.f32 %v292_v62, %v1157_v27  ;;  %v271_v27 = vmax.f32 %v1170_v35, %v269_v15 }
 0x1ba   : > { %v311_v63 = vpop.permute.xlu0 %310  ;;  %v289_v0 = vpop.permute.xlu1 %288 }
 0x1bb   : > { %v316_v4 = vsel %vm298_vm5, %v311_v63, 0.0  ;;  %v293_v5 = vsel %vm1209_vm4, %v289_v0, 0.0  ;;  %v416_v0 = vstv %s1276_s28 }
 0x1bc   : > { %v318_v7 = vadd.f32 %v316_v4, %v294_v3  ;;  %v295_v8 = vadd.f32 %v293_v5, %v1166_v34  ;;  %v520_v34 = vstv %s1240_s8  ;;  %v512_v3 = vstv %s1278_s29 }
 0x1be   : > { %v301_v9 = vpop.permute.xlu0 %300  ;;  %v313_v10 = vpop.permute.xlu1 %312  ;;  %v340_v18 = vrot.slane %v318_v7, 7  ;;  %v365_v22 = vrot.slane %v318_v7, 1 }
 0x1bf   : > { %v306_v11 = vsel %vm298_vm5, %v301_v9, -inf  ;;  %v317_v12 = vsel %vm298_vm5, %v313_v10, 0.0 }
 0x1c0   : > { %v319_v16 = vadd.f32 %v317_v12, %v295_v8  ;;  %v308_v23 = vmax.f32 %v270_v14, %v306_v11 }
 0x1c2   : > { %v341_v24 = vrot.slane %v319_v16, 7  ;;  %v366_v25 = vrot.slane %v319_v16, 1  ;;  %v303_v26 = vpop.permute.xlu1 %302  ;;  %v320_v39 = vrot.slane %v308_v23, 7  ;;  %v348_v47 = vrot.slane %v308_v23, 1 }
 0x1c3   : > { %v307_v28 = vsel %vm298_vm5, %v303_v26, -inf  ;;  %v598_v26 = vstv %s1299_s30 }
 0x1c4   : > { %v342_v31 = vsel %vm324_vm6, %v340_v18, %v341_v24  ;;  %v343_v32 = vsel %vm324_vm6, %v341_v24, %v340_v18  ;;  %v368_v33 = vsel %vm350_vm8, %v366_v25, %v365_v22  ;;  %v309_v38 = vmax.f32 %v271_v27, %v307_v28 }
 0x1c5   : > { %v344_v35 = vsel %vm330_vm7, %v343_v32, 0.0  ;;  %v347_v36 = vadd.f32 %v342_v31, %v319_v16  ;;  %v370_v37 = vsel %vm358_vm9, %v368_v33, 0.0  ;;  %v367_v43 = vsel %vm350_vm8, %v365_v22, %v366_v25 }
 0x1c6   : > { %v346_v40 = vadd.f32 %v344_v35, %v318_v7  ;;  %v321_v45 = vrot.slane %v309_v38, 7  ;;  %v349_v46 = vrot.slane %v309_v38, 1  ;;  %v508_v7 = vstv %s1287_s20 }
 0x1c7   : > { %v372_v44 = vadd.f32 %v370_v37, %v347_v36  ;;  %v594_v32 = vstv %s1308_s7 }
 0x1c8   : > { %v371_v48 = vadd.f32 %v367_v43, %v346_v40  ;;  %v325_v52 = vsel %vm324_vm6, %v320_v39, %v321_v45  ;;  %v326_v53 = vsel %vm324_vm6, %v321_v45, %v320_v39  ;;  %v352_v60 = vsel %vm350_vm8, %v349_v46, %v348_v47 }
 0x1c9   : > { %v1301_v51 = vmul.f32 0.027777778, %v372_v44  ;;  %v336_v58 = vsel %vm330_vm7, %v326_v53, -inf  ;;  %v339_v59 = vmax.f32 %v309_v38, %v325_v52  ;;  %v362_v63 = vsel %vm358_vm9, %v352_v60, -inf }
 0x1ca   : > { %v1310_v55 = vmul.f32 0.027777778, %v371_v48  ;;  %v338_v62 = vmax.f32 %v308_v23, %v336_v58  ;;  %v351_v4 = vsel %vm350_vm8, %v348_v47, %v349_v46 }
 0x1cb   : > { %v1322_v5 = vmax.f32 %v339_v59, %v362_v63  ;;  %v480_v6 = vmul.f32 %v478_v13, %v1301_v51  ;;  %v382_v11 = vmul.f32 %v380_v17, %v1301_v51  ;;  %v440_v16 = vmul.f32 %v438_v20, %v1301_v51 }
 0x1cc   : > { %v1328_v8 = vmax.f32 %v338_v62, %v351_v4  ;;  %v479_v9 = vmul.f32 %v478_v13, %v1310_v55  ;;  %v381_v10 = vmul.f32 %v380_v17, %v1310_v55  ;;  %v439_v23 = vmul.f32 %v438_v20, %v1310_v55 }
 0x1cd   : > { %v476_v12 = vmul.f32 %v474_v19, %v1322_v5  ;;  %v378_v14 = vmul.f32 %v376_v29, %v1322_v5  ;;  %v436_v15 = vmul.f32 %v434_v30, %v1322_v5  ;;  %v556_v20 = vmul.f32 %v554_v41, %v1322_v5 }
 0x1ce   : > { %v475_v18 = vmul.f32 %v474_v19, %v1328_v8  ;;  %v377_v22 = vmul.f32 %v376_v29, %v1328_v8  ;;  %v435_v13 = vmul.f32 %v434_v30, %v1328_v8  ;;  %v555_v30 = vmul.f32 %v554_v41, %v1328_v8 }
 0x1cf   : > { %v1347_v17 = vadd.f32 %v480_v6, %v476_v12  ;;  %v384_v24 = vadd.f32 %v382_v11, %v378_v14  ;;  %v442_v25 = vadd.f32 %v440_v16, %v436_v15  ;;  %v522_v36 = vmul.f32 %v520_v34, %v1322_v5 }
 0x1d0   : > { %v1350_v27 = vadd.f32 %v479_v9, %v475_v18  ;;  %v383_v28 = vadd.f32 %v381_v10, %v377_v22  ;;  %v441_v31 = vadd.f32 %v439_v23, %v435_v13  ;;  %v526_v37 = vmul.f32 %v524_v21, %v1301_v51 }
 0x1d1   : > { %486 = vrot.lane.b32.xlu1 %v1347_v17, %s976_s24  ;;  %v386_v19 = vrot.slane %v384_v24, 7  ;;  %v444_v29 = vrot.slane %v442_v25, 7  ;;  %v559_v38 = vmul.f32 %v558_v42, %v1310_v55  ;;  %v560_v39 = vmul.f32 %v558_v42, %v1301_v51 }
 0x1d2   : > { %483 = vrot.lane.b32.xlu0 %v1350_v27, %s976_s24  ;;  %v385_v33 = vrot.slane %v383_v28, 7  ;;  %v443_v35 = vrot.slane %v441_v31, 7  ;;  %v613_v40 = vmul.f32 %v612_v49, %v1328_v8  ;;  %v614_v41 = vmul.f32 %v612_v49, %v1322_v5 }
 0x1d3   : > { %v617_v45 = vmul.f32 %v616_v50, %v1310_v55  ;;  %v618_v46 = vmul.f32 %v616_v50, %v1301_v51  ;;  %v561_v48 = vadd.f32 %v559_v38, %v555_v30  ;;  %v562_v49 = vadd.f32 %v560_v39, %v556_v20 }
 0x1d4   : > { %v1371_v43 = vsel %vm324_vm6, %v385_v33, %v386_v19  ;;  %v388_v44 = vsel %vm324_vm6, %v386_v19, %v385_v33  ;;  %v446_v47 = vsel %vm324_vm6, %v444_v29, %v443_v35  ;;  %v521_v50 = vmul.f32 %v520_v34, %v1328_v8 }
 0x1d5   : > { %394 = vrot.lane.b32.xlu1 %v1371_v43, %s976_s24  ;;  %v1381_v42 = vsel %vm330_vm7, %v388_v44, 0.0  ;;  %v619_v52 = vadd.f32 %v617_v45, %v613_v40  ;;  %v417_v53 = vmul.f32 %v416_v0, %v1328_v8  ;;  %v418_v58 = vmul.f32 %v416_v0, %v1322_v5 }
 0x1d6   : > { %391 = vrot.lane.b32.xlu0 %v1381_v42, %s976_s24  ;;  %v525_v59 = vmul.f32 %v524_v21, %v1310_v55  ;;  %v620_v60 = vadd.f32 %v618_v46, %v614_v41  ;;  %v421_v62 = vmul.f32 %v420_v54, %v1310_v55  ;;  %v422_v63 = vmul.f32 %v420_v54, %v1301_v51 }
 0x1d7   : > { %v1403_v4 = vsel %vm324_vm6, %v443_v35, %v444_v29  ;;  %v1407_v34 = vsel %vm330_vm7, %v446_v47, 0.0  ;;  %v510_v0 = vmul.f32 %v508_v7, %v1322_v5  ;;  %v514_v21 = vmul.f32 %v512_v3, %v1301_v51 }
 0x1d8   : > { %v563_v54 = vrot.slane %v561_v48, 1  ;;  %v564_v6 = vrot.slane %v562_v49, 1  ;;  %v423_v9 = vadd.f32 %v421_v62, %v417_v53  ;;  %v424_v10 = vadd.f32 %v422_v63, %v418_v58 }
 0x1d9   : > { %452 = vrot.lane.b32.xlu1 %v1403_v4, %s976_s24  ;;  %v1419_v11 = vadd.f32 %v526_v37, %v522_v36  ;;  %v1421_v12 = vadd.f32 %v525_v59, %v521_v50  ;;  %v621_v14 = vrot.slane %v619_v52, 1  ;;  %v1423_v15 = vadd.f32 %v514_v21, %v510_v0 }
 0x1da   : > { %449 = vrot.lane.b32.xlu0 %v1407_v34, %s976_s24  ;;  %v622_v16 = vrot.slane %v620_v60, 1  ;;  %v425_v18 = vrot.slane %v423_v9, 7  ;;  %v426_v22 = vrot.slane %v424_v10, 7  ;;  %v509_v13 = vmul.f32 %v508_v7, %v1328_v8 }
 0x1db   : > { %v513_v23 = vmul.f32 %v512_v3, %v1310_v55  ;;  %v595_v24 = vmul.f32 %v594_v32, %v1328_v8  ;;  %v596_v25 = vmul.f32 %v594_v32, %v1322_v5  ;;  %v599_v28 = vmul.f32 %v598_v26, %v1310_v55 }
 0x1dc   : > { %v566_v31 = vsel %vm350_vm8, %v564_v6, %v563_v54  ;;  %v1442_v19 = vsel %vm324_vm6, %v425_v18, %v426_v22  ;;  %v428_v3 = vsel %vm324_vm6, %v426_v22, %v425_v18  ;;  %v600_v7 = vmul.f32 %v598_v26, %v1301_v51 }
 0x1dd   : > { %532 = vrot.lane.b32.xlu1 %v1419_v11, %s976_s24  ;;  %v1453_v55 = vsel %vm330_vm7, %v428_v3, 0.0  ;;  %v1455_v5 = vadd.f32 %v513_v23, %v509_v13  ;;  %v601_v8 = vadd.f32 %v599_v28, %v595_v24  ;;  %v1459_v29 = vsel %vm358_vm9, %v566_v31, 0.0 }
 0x1de   : > { %529 = vrot.lane.b32.xlu0 %v1421_v12, %s976_s24  ;;  %v602_v32 = vadd.f32 %v600_v7, %v596_v25  ;;  %v1465_v51 = vsel %vm350_vm8, %v563_v54, %v564_v6  ;;  %v624_v1 = vsel %vm350_vm8, %v622_v16, %v621_v14  ;;  %v1489_v37 = vsel %vm350_vm8, %v621_v14, %v622_v16 }
 0x1df   : > { %v603_v30 = vrot.slane %v601_v8, 1  ;;  %v1479_v35 = vsel %vm358_vm9, %v624_v1, 0.0 }
 0x1e0   : > { %v604_v26 = vrot.slane %v602_v32, 1 }
 0x1e1   : > { %572 = vrot.lane.b32.xlu1 %v1459_v29, %s976_s24 }
 0x1e2   : > { %569 = vrot.lane.b32.xlu0 %v1465_v51, %s976_s24  ;;  %v606_v20 = vsel %vm350_vm8, %v604_v26, %v603_v30  ;;  %v1475_v33 = vsel %vm350_vm8, %v603_v30, %v604_v26 }
 0x1e3   : > { %v1483_v36 = vsel %vm358_vm9, %v606_v20, 0.0 }
 0x1e5   : > { %630 = vrot.lane.b32.xlu1 %v1479_v35, %s976_s24 }
 0x1e6   : > { %627 = vrot.lane.b32.xlu0 %v1489_v37, %s976_s24 }
 0x243   : > { %v487_v38 = vpop.permute.xlu1 %486 }
 0x244   : > { %v484_v39 = vpop.permute.xlu0 %483  ;;  %v488_v40 = vsel %vm241_vm1, %v487_v38, %v1347_v17 }
 0x245   : > { %491 = vrot.lane.b32.xlu1 %v488_v40, %s976_s24  ;;  %v485_v2 = vsel %vm241_vm1, %v484_v39, %v1350_v27 }
 0x246   : > { %489 = vrot.lane.b32.xlu0 %v485_v2, %s976_s24 }
 0x247   : > { %v395_v41 = vpop.permute.xlu1 %394 }
 0x248   : > { %v392_v44 = vpop.permute.xlu0 %391  ;;  %v396_v56 = vsel %vm241_vm1, %v395_v41, %v1371_v43 }
 0x249   : > { %399 = vrot.lane.b32.xlu1 %v396_v56, %s976_s24  ;;  %v393_v45 = vsel %vm241_vm1, %v392_v44, %v1381_v42 }
 0x24a   : > { %397 = vrot.lane.b32.xlu0 %v393_v45, %s976_s24 }
 0x24b   : > { %v453_v46 = vpop.permute.xlu1 %452 }
 0x24c   : > { %v450_v47 = vpop.permute.xlu0 %449  ;;  %v454_v48 = vsel %vm241_vm1, %v453_v46, %v1403_v4 }
 0x24d   : > { %457 = vrot.lane.b32.xlu1 %v454_v48, %s976_s24  ;;  %v451_v49 = vsel %vm241_vm1, %v450_v47, %v1407_v34 }
 0x24e   : > { %455 = vrot.lane.b32.xlu0 %v451_v49, %s976_s24 }
 0x24f   : > { %v533_v50 = vpop.permute.xlu1 %532 }
 0x250   : > { %v530_v52 = vpop.permute.xlu0 %529  ;;  %v534_v53 = vsel %vm241_vm1, %v533_v50, %v1419_v11 }
 0x251   : > { %537 = vrot.lane.b32.xlu1 %v534_v53, %s976_s24  ;;  %v531_v58 = vsel %vm241_vm1, %v530_v52, %v1421_v12 }
 0x252   : > { %535 = vrot.lane.b32.xlu0 %v531_v58, %s976_s24 }
 0x253   : > { %v573_v59 = vpop.permute.xlu1 %572 }
 0x254   : > { %v570_v60 = vpop.permute.xlu0 %569  ;;  %v574_v62 = vsel %vm241_vm1, %v573_v59, %v1459_v29 }
 0x255   : > { %577 = vrot.lane.b32.xlu1 %v574_v62, %s976_s24  ;;  %v571_v63 = vsel %vm241_vm1, %v570_v60, %v1465_v51 }
 0x256   : > { %575 = vrot.lane.b32.xlu0 %v571_v63, %s976_s24 }
 0x257   : > { %v631_v0 = vpop.permute.xlu1 %630 }
 0x258   : > { %v628_v21 = vpop.permute.xlu0 %627  ;;  %v632_v54 = vsel %vm241_vm1, %v631_v0, %v1479_v35 }
 0x259   : > { %635 = vrot.lane.b32.xlu1 %v632_v54, %s976_s24  ;;  %v629_v6 = vsel %vm241_vm1, %v628_v21, %v1489_v37 }
 0x25a   : > { %633 = vrot.lane.b32.xlu0 %v629_v6, %s976_s24  ;;  %s651_s24 = sld [smem:[#allocation2]] }
 0x260   : > { %v652_v54 = vstv %s651_s24 }
 0x2b7   : > { %v492_v9 = vpop.permute.xlu1 %491 }
 0x2b8   : > { %v490_v10 = vpop.permute.xlu0 %489  ;;  %v494_v14 = vsel %vm241_vm1, %v492_v9, %v1347_v17 }
 0x2b9   : > { %499 = vrot.lane.b32.xlu1 %v494_v14, %s977_s27  ;;  %v493_v16 = vsel %vm241_vm1, %v490_v10, %v1350_v27 }
 0x2ba   : > { %497 = vrot.lane.b32.xlu0 %v493_v16, %s977_s27 }
 0x2bb   : > { %v400_v18 = vpop.permute.xlu1 %399 }
 0x2bc   : > { %v398_v22 = vpop.permute.xlu0 %397  ;;  %v402_v13 = vsel %vm241_vm1, %v400_v18, %v1371_v43 }
 0x2bd   : > { %407 = vrot.lane.b32.xlu1 %v402_v13, %s977_s27  ;;  %v401_v23 = vsel %vm241_vm1, %v398_v22, %v1381_v42 }
 0x2be   : > { %405 = vrot.lane.b32.xlu0 %v401_v23, %s977_s27 }
 0x2bf   : > { %v458_v17 = vpop.permute.xlu1 %457 }
 0x2c0   : > { %v456_v24 = vpop.permute.xlu0 %455  ;;  %v460_v25 = vsel %vm241_vm1, %v458_v17, %v1403_v4 }
 0x2c1   : > { %465 = vrot.lane.b32.xlu1 %v460_v25, %s978_s6  ;;  %v459_v27 = vsel %vm241_vm1, %v456_v24, %v1407_v34 }
 0x2c2   : > { %463 = vrot.lane.b32.xlu0 %v459_v27, %s978_s6 }
 0x2c3   : > { %v538_v43 = vpop.permute.xlu1 %537 }
 0x2c4   : > { %v536_v28 = vpop.permute.xlu0 %535  ;;  %v540_v31 = vsel %vm241_vm1, %v538_v43, %v1419_v11 }
 0x2c5   : > { %545 = vrot.lane.b32.xlu1 %v540_v31, %s978_s6  ;;  %v539_v42 = vsel %vm241_vm1, %v536_v28, %v1421_v12 }
 0x2c6   : > { %543 = vrot.lane.b32.xlu0 %v539_v42, %s978_s6 }
 0x2c7   : > { %v578_v4 = vpop.permute.xlu1 %577 }
 0x2c8   : > { %v576_v3 = vpop.permute.xlu0 %575  ;;  %v580_v7 = vsel %vm241_vm1, %v578_v4, %v1459_v29 }
 0x2c9   : > { %585 = vrot.lane.b32.xlu1 %v580_v7, %s977_s27  ;;  %v579_v34 = vsel %vm241_vm1, %v576_v3, %v1465_v51 }
 0x2ca   : > { %583 = vrot.lane.b32.xlu0 %v579_v34, %s977_s27  ;;  %s766_s27 = sshll.u32 %s1132_s18, 4 }
 0x2cb   : > { %v636_v11 = vpop.permute.xlu1 %635  ;;  %s203_s12 = scalar_lea.vmem [#allocation8], %s766_s27 }
 0x2cc   : > { %v634_v8 = vpop.permute.xlu0 %633  ;;  %v638_v32 = vsel %vm241_vm1, %v636_v11, %v1479_v35  ;;  %s671_s21 = sshll.u32 %s203_s12, 4  ;;  %s1602_s21 = int_to_ptr.vmem [resolvable:$true] %s671_s21 }
 0x2cd   : > { %643 = vrot.lane.b32.xlu1 %v638_v32, %s978_s6  ;;  %v637_v12 = vsel %vm241_vm1, %v634_v8, %v1489_v37  ;;  %s900_s9 = scalar_lea.vmem %s1602_s21, 256  ;;  %p907_p10 = scmp.lt.s32.totalorder %s1602_s21, %s905_s11 }
 0x2ce   : > { %641 = vrot.lane.b32.xlu0 %v637_v12, %s978_s6  ;;  %s790_s6 = sshll.u32 %s1026_s2, 8  ;;  %s658_s2 = scalar_lea.sflag [#allocation5], %s1132_s18 }
 0x2cf   : > { %s1600_s8 = scalar_lea.hbm %s1651_s3, %s790_s6  ;;  %p901_p13 = scmp.ne.s32.totalorder %s1602_s21, %s900_s9 }
 0x2d0   : > { %p908_p1 = scmp.lt.s32.totalorder %s906_s13, %s900_s9 }
 0x2d1   : > { %p902_p8 = pnand %p901_p13, %p1667_p12 }
 0x2d2   : > { %p909_p4 = por %p908_p1, %p907_p10 }
 0x2d3   : > { %p903_p9 = pneg %p902_p8 }
 0x2d5   : > { %p910_p11 = pnand %p909_p4, %p903_p9 }
 0x32b   : > { %v500_v29 = vpop.permute.xlu1 %499 }
 0x32c   : > { %v498_v30 = vpop.permute.xlu0 %497  ;;  %v504_v44 = vsel %vm1209_vm4, %v500_v29, 0.0 }
 0x32d   : > { %v503_v45 = vsel %vm1209_vm4, %v498_v30, 0.0 }
 0x32f   : > { %v408_v1 = vpop.permute.xlu1 %407 }
 0x330   : > { %v412_v51 = vsel %vm1209_vm4, %v408_v1, 0.0  ;;  %v406_v26 = vpop.permute.xlu0 %405 }
 0x331   : > { %v411_v20 = vsel %vm1209_vm4, %v406_v26, 0.0  ;;  %v432_v38 = vadd.f32 %v1442_v19, %v412_v51 }
 0x332   : > { %v431_v39 = vadd.f32 %v1453_v55, %v411_v20 }
 0x333   : > { %v466_v35 = vpop.permute.xlu1 %465 }
 0x334   : > { %v470_v37 = vsel %vm298_vm5, %v466_v35, 0.0  ;;  %v464_v40 = vpop.permute.xlu0 %463 }
 0x335   : > { %v472_v2 = vadd.f32 %v470_v37, %v432_v38  ;;  %v469_v41 = vsel %vm298_vm5, %v464_v40, 0.0 }
 0x336   : > { %v471_v56 = vadd.f32 %v469_v41, %v431_v39 }
 0x337   : > { %v506_v19 = vadd.f32 %v504_v44, %v472_v2  ;;  %v546_v46 = vpop.permute.xlu1 %545 }
 0x338   : > { %v505_v47 = vadd.f32 %v503_v45, %v471_v56  ;;  %v544_v55 = vpop.permute.xlu0 %543  ;;  %v550_v49 = vsel %vm298_vm5, %v546_v46, 0.0 }
 0x339   : > { %v518_v48 = vadd.f32 %v1423_v15, %v506_v19  ;;  %v549_v53 = vsel %vm298_vm5, %v544_v55, 0.0 }
 0x33a   : > { %v517_v50 = vadd.f32 %v1455_v5, %v505_v47 }
 0x33b   : > { %v552_v52 = vadd.f32 %v550_v49, %v518_v48  ;;  %v586_v58 = vpop.permute.xlu1 %585 }
 0x33c   : > { %v551_v59 = vadd.f32 %v549_v53, %v517_v50  ;;  %v590_v60 = vsel %vm1209_vm4, %v586_v58, 0.0  ;;  %v584_v62 = vpop.permute.xlu0 %583 }
 0x33d   : > { %v592_v63 = vadd.f32 %v590_v60, %v552_v52  ;;  %v589_v15 = vsel %vm1209_vm4, %v584_v62, 0.0 }
 0x33e   : > { %v591_v0 = vadd.f32 %v589_v15, %v551_v59 }
 0x33f   : > { %v610_v21 = vadd.f32 %v1483_v36, %v592_v63  ;;  %v644_v5 = vpop.permute.xlu1 %643 }
 0x340   : > { %v648_v6 = vsel %vm298_vm5, %v644_v5, 0.0  ;;  %v609_v9 = vadd.f32 %v1475_v33, %v591_v0  ;;  %v642_v10 = vpop.permute.xlu0 %641 }
 0x341   : > { %v650_v14 = vadd.f32 %v648_v6, %v610_v21  ;;  %v647_v61 = vsel %vm298_vm5, %v642_v10, 0.0 }
 0x342   : > { %v649_v16 = vadd.f32 %v647_v61, %v609_v9 }
 0x343   : > { %v654_v18 = vadd.f32 %v652_v54, %v650_v14 }
 0x344   : > { %v653_v33 = vadd.f32 %v652_v54, %v649_v16 }
 0x345   : > { %656 = vst.msk [vmem:[%s203_s12 + $0x8] sm:$0xff] %vm212_vm0, %v654_v18 }
 0x346   : > { %655 = vst.msk [vmem:[%s203_s12] sm:$0xff] %vm212_vm0, %v653_v33 }
 0x347   : > { %913 = shalt.err (!%p910_p11)
}
 0x348   : > { %s914_s23 = scalar_lea.hbm %s1600_s8, 256  ;;  %s918_s20 = scalar_lea.hbm %s1651_s3, 512 }
 0x349   : > { %p915_p0 = scmp.ne.s32.totalorder %s1600_s8, %s914_s23  ;;  %p919_p6 = scmp.lt.u32.totalorder %s1600_s8, %s1651_s3 }
 0x34a   : > { %p920_p5 = scmp.lt.u32.totalorder %s918_s20, %s914_s23  ;;  %p922_p13 = scmp.lt.u32.totalorder %s914_s23, %s1600_s8 }
 0x34b   : > { %p916_p2 = pnand %p915_p0, %p1667_p12 }
 0x34c   : > { %p921_p3 = por %p920_p5, %p919_p6 }
 0x34d   : > { %p917_p7 = pneg %p916_p2 }
 0x34e   : > { %p923_p8 = por %p922_p13, %p921_p3 }
 0x350   : > { %p924_p9 = pnand %p923_p8, %p917_p7 }
 0x352   : > { %927 = shalt.err (!%p924_p9)
}
 0x353   : > { %s980_s24 = smov 128   ;;  %s981_s27 = smov 8  }
 0x354   : > { %797 = dma.vmem_to_hbm [thread:$0]  (%p1667_p12), %s1602_s21, 256, %s1600_s8, %s658_s2, %s980_s24, %s980_s24, %s981_s27  }
 0x355 PF: > { %s686_s6 = sand.u32 1, %s958_s14   ;;  %p1668_p10 = scmp.ne.s32.totalorder %s1658_s26, 0 }
 0x356   : > { %p1669_p1 = scmp.ge.s32.totalorder %s970_s17, 2  ;;  %s687_s12 = scalar_lea.sflag [#allocation5], %s686_s6 }
 0x358   : > { %p808_p4 = pnand %p1669_p1, %p1668_p10 }
 0x35a   : > { %953 = dma.done.wait (!%p808_p4), %s687_s12, 256  }
 0x35b   : > { %955 = vsyncadd (!%p808_p4), %s687_s12, 4294967040  ;;  %p18_p11 = scmp.ge.s32.totalorder %s1030_s19, 4   ;;  %s1670_s14 = smov %s962_s15 }
 0x35c   : > { %s1671_s15 = smov %s966_s16  ;;  %s1672_s16 = smov %s1042_s22 }
 0x35d   : > { %s1673_s17 = smov %s1030_s19  ;;  %20 = sbr.rel (!%p18_p11) target bundleno = 8 (0x8), region = 82 }
 0x364   :  { %692 = vsyncpa [#allocation4], 1 }
 0x365   :  { %694 = vsyncpa [#allocation4 + $0x1], 1 }
 0x366   :  { %695 = vsyncpa [#allocation5], 1 }
 0x367   :  { %697 = vsyncpa [#allocation5 + $0x1], 1 }
 0x368   :  { %698 = vsyncpa [#allocation6], 1 }
 0x369   :  { %700 = vsyncpa [#allocation6 + $0x1], 1 }

</bundles_post_ra>
